<compile_context>
chip_gen: v6e
topology: v6e:2x2x1
jax: 0.10.0
libtpu: 0.0.40
codegen_flags: <defaults>
</compile_context>

<pallas_src>
import functools

import jax
import jax.numpy as jnp
from jax import lax
from jax.experimental import pallas as pl
from jax.experimental.pallas import tpu as pltpu


def _round_up(x, m):
    return (x + m - 1) // m * m


def ccb_kernel(feat_ref, pred_ref, w_ref, out_ref, acc_ref):
    # feat_ref : (Cin_aug, TILE_HW)   bf16  (channels+ones row) x spatial tile
    # pred_ref : (K_pad,   TILE_HW)   bf16  classes x spatial tile
    # w_ref    : (Cin_aug, dim_pad)   f32   1x1-conv weight (bias folded in)
    # out_ref  : (K_pad,   dim_pad)   f32
    # acc_ref  : (K_pad,   Cin_aug)   f32   running  pred @ feat_aug^T  over HW
    t = pl.program_id(1)

    @pl.when(t == 0)
    def _init():
        acc_ref[...] = jnp.zeros_like(acc_ref)

    # acc[k, c] += sum_hw pred[k, hw] * feat_aug[c, hw]   (contraction on lanes)
    acc_ref[...] += lax.dot_general(
        pred_ref[...], feat_ref[...],
        (((1,), (1,)), ((), ())),
        preferred_element_type=jnp.float32)

    @pl.when(t == pl.num_programs(1) - 1)
    def _finalize():
        # res[k, d] = sum_c acc[k, c] * W_aug[c, d]  (conv bias via ones channel)
        out_ref[...] = jnp.dot(acc_ref[...], w_ref[...],
                               preferred_element_type=jnp.float32)


@functools.partial(jax.jit, static_argnames=("tile_hw",))
def ccb_forward(feat, pred, weight, bias, *, tile_hw=None):
    """CCB forward.

    feat:   (B, Cin, H, W)  float
    pred:   (B, K,  Hp, Wp) float, Hp*Wp == H*W
    weight: (dim, Cin)      1x1-conv weight (PyTorch layout, kernel dims dropped)
    bias:   (dim,)
    returns (B, K, dim) float32
    """
    B, Cin, H, W = feat.shape
    K = pred.shape[1]
    dim = weight.shape[0]
    HW = H * W
    assert pred.shape[0] == B and pred.shape[2] * pred.shape[3] == HW

    cin_aug = _round_up(Cin + 1, 8)     # +1 ones channel carries the conv bias
    k_pad = _round_up(K, 8)
    dim_pad = _round_up(dim, 128)       # lane-dense output / weight columns

    if tile_hw is None:
        # Keep the (double-buffered) bf16 input tiles around a few MiB per step.
        budget_bytes = 4 * 1024 * 1024
        tile_hw = (budget_bytes // (2 * (cin_aug + k_pad))) // 128 * 128
        tile_hw = max(256, min(tile_hw, 8192))
    tile_hw = min(tile_hw, _round_up(HW, 128))
    hw_pad = _round_up(HW, tile_hw)
    n_tiles = hw_pad // tile_hw

    # feat -> (B, Cin_aug, HW_pad) bf16, ones channel at row Cin, zero padding.
    feat_f = feat.reshape(B, Cin, HW).astype(jnp.bfloat16)
    ones = jnp.ones((B, 1, HW), jnp.bfloat16)
    feat_aug = jnp.concatenate([feat_f, ones], axis=1)
    feat_p = jnp.pad(feat_aug,
                     ((0, 0), (0, cin_aug - (Cin + 1)), (0, hw_pad - HW)))

    # pred -> (B, K_pad, HW_pad) bf16 (zero padding kills padded HW/K terms).
    pred_f = pred.reshape(B, K, HW).astype(jnp.bfloat16)
    pred_p = jnp.pad(pred_f, ((0, 0), (0, k_pad - K), (0, hw_pad - HW)))

    # W_aug: (Cin_aug, dim_pad) f32, row Cin holds the conv bias.
    w_p = jnp.zeros((cin_aug, dim_pad), jnp.float32)
    w_p = w_p.at[:Cin, :dim].set(weight.T.astype(jnp.float32))
    w_p = w_p.at[Cin, :dim].set(bias.astype(jnp.float32))

    flops = (2 * B * n_tiles * k_pad * tile_hw * cin_aug
             + 2 * B * k_pad * cin_aug * dim_pad)
    bytes_accessed = (feat_p.size * 2 + pred_p.size * 2
                      + w_p.size * 4 + B * k_pad * dim_pad * 4)

    out = pl.pallas_call(
        ccb_kernel,
        out_shape=jax.ShapeDtypeStruct((B, k_pad, dim_pad), jnp.float32),
        grid=(B, n_tiles),
        in_specs=[
            pl.BlockSpec((pl.Squeezed(), cin_aug, tile_hw),
                         lambda b, t: (b, 0, t)),
            pl.BlockSpec((pl.Squeezed(), k_pad, tile_hw),
                         lambda b, t: (b, 0, t)),
            pl.BlockSpec((cin_aug, dim_pad), lambda b, t: (0, 0)),
        ],
        out_specs=pl.BlockSpec((pl.Squeezed(), k_pad, dim_pad),
                               lambda b, t: (b, 0, 0)),
        scratch_shapes=[pltpu.VMEM((k_pad, cin_aug), jnp.float32)],
        compiler_params=pltpu.CompilerParams(
            dimension_semantics=("parallel", "arbitrary")),
        cost_estimate=pl.CostEstimate(flops=flops, transcendentals=0,
                                      bytes_accessed=bytes_accessed),
    )(feat_p, pred_p, w_p)

    return out[:, :K, :dim]


def ccb_reference(feat, pred, weight, bias):
    """Pure-JAX reference matching the PyTorch module (f32)."""
    B, Cin, H, W = feat.shape
    tmp = jnp.einsum('bchw,dc->bhwd', feat, weight) + bias      # 1x1 conv
    tmp = tmp.reshape(B, H * W, weight.shape[0])                # (B, HW, dim)
    p = pred.reshape(B, pred.shape[1], -1)                      # (B, K, HW)
    return jnp.einsum('bkn,bnd->bkd', p, tmp)                   # (B, K, dim)


if __name__ == "__main__":
    key = jax.random.PRNGKey(0)
    k_feat, k_pred, k_w, k_b = jax.random.split(key, 4)

    B, in_feat, H, W = 2, 4, 16, 16     # feat: (B, in_feat, H, W)
    K, dim = 8, 32                      # pred classes, CCB projection dim

    feat = jax.random.normal(k_feat, (B, in_feat, H, W), jnp.float32)
    pred = jax.random.normal(k_pred, (B, K, H, W), jnp.float32)
    weight = (jax.random.normal(k_w, (dim, in_feat), jnp.float32)
              / jnp.sqrt(jnp.float32(in_feat)))
    bias = 0.1 * jax.random.normal(k_b, (dim,), jnp.float32)

    out = ccb_forward(feat, pred, weight, bias)
    jax.block_until_ready(out)
    assert out.shape == (B, K, dim)

    ref = ccb_reference(feat, pred, weight, bias)
    max_err = float(jnp.max(jnp.abs(out - ref)))
    # bf16 matmul operands with f32 accumulation -> loose tolerance vs f32 ref.
    assert jnp.allclose(out, ref, rtol=5e-2, atol=1.0), max_err

    print("KERNEL_OK")
</pallas_src>

<mosaic_0001>
module attributes {stable_mosaic.version = 11 : i64} {
  func.func @ccb_kernel(%arg0: i32, %arg1: i32, %arg2: memref<1x8x256xbf16, #tpu.memory_space<vmem>>, %arg3: memref<1x8x256xbf16, #tpu.memory_space<vmem>>, %arg4: memref<8x128xf32, #tpu.memory_space<vmem>>, %arg5: memref<1x8x128xf32, #tpu.memory_space<vmem>>, %arg6: memref<8x8xf32, #tpu.memory_space<vmem>>) attributes {dimension_semantics = [#tpu.dimension_semantics<parallel>, #tpu.dimension_semantics<arbitrary>], iteration_bounds = array<i64: 2, 1>, scalar_prefetch = 0 : i64, scratch_operands = 1 : i64, tpu.core_type = #tpu.core_type<tc>, window_params = [{transform_indices = @transform_0, window_bounds = array<i64: 1, 8, 256>}, {transform_indices = @transform_1, window_bounds = array<i64: 1, 8, 256>}, {pipeline_mode = #tpu.pipeline_mode<synchronous>, transform_indices = @transform_2, window_bounds = array<i64: 8, 128>}, {transform_indices = @transform_3, window_bounds = array<i64: 1, 8, 128>}]} {
    %c0_i32 = arith.constant 0 : i32
    %0 = arith.cmpi eq, %arg1, %c0_i32 : i32
    %1 = arith.extui %0 : i1 to i32
    %c0_i32_0 = arith.constant 0 : i32
    %2 = arith.cmpi ne, %1, %c0_i32_0 : i32
    scf.if %2 {
      %cst_12 = arith.constant 0.000000e+00 : f32
      %14 = vector.broadcast %cst_12 : f32 to vector<8x8xf32>
      %c0_13 = arith.constant 0 : index
      %c0_14 = arith.constant 0 : index
      %15 = vector.load %arg6[%c0_13, %c0_14] : memref<8x8xf32, #tpu.memory_space<vmem>>, vector<8x8xf32>
      tpu.vector_store %arg6[%c0_13, %c0_14], %14 {strides = array<i32>} : memref<8x8xf32, #tpu.memory_space<vmem>>, vector<8x8xf32>,
    } else {
    }
    %c0 = arith.constant 0 : index
    %c0_1 = arith.constant 0 : index
    %3 = vector.load %arg6[%c0, %c0_1] : memref<8x8xf32, #tpu.memory_space<vmem>>, vector<8x8xf32>
    %c0_2 = arith.constant 0 : index
    %c0_3 = arith.constant 0 : index
    %c0_4 = arith.constant 0 : index
    %4 = vector.load %arg3[%c0_2, %c0_3, %c0_4] : memref<1x8x256xbf16, #tpu.memory_space<vmem>>, vector<1x8x256xbf16>
    %5 = vector.shape_cast %4 : vector<1x8x256xbf16> to vector<8x256xbf16>
    %c0_5 = arith.constant 0 : index
    %c0_6 = arith.constant 0 : index
    %c0_7 = arith.constant 0 : index
    %6 = vector.load %arg2[%c0_5, %c0_6, %c0_7] : memref<1x8x256xbf16, #tpu.memory_space<vmem>>, vector<1x8x256xbf16>
    %7 = vector.shape_cast %6 : vector<1x8x256xbf16> to vector<8x256xbf16>
    %cst = arith.constant dense<0.000000e+00> : vector<8x8xf32>
    %8 = tpu.matmul %5, %7, %cst {dimension_numbers = #tpu.dot_dimension_numbers<[1], [1], [0], [0], [0, 0, 1, 0], [], []>} : vector<8x256xbf16>, vector<8x256xbf16>, vector<8x8xf32> -> vector<8x8xf32>
    %9 = arith.addf %3, %8 : vector<8x8xf32>
    %c0_8 = arith.constant 0 : index
    %c0_9 = arith.constant 0 : index
    %10 = vector.load %arg6[%c0_8, %c0_9] : memref<8x8xf32, #tpu.memory_space<vmem>>, vector<8x8xf32>
    tpu.vector_store %arg6[%c0_8, %c0_9], %9 {strides = array<i32>} : memref<8x8xf32, #tpu.memory_space<vmem>>, vector<8x8xf32>,
    %c0_i32_10 = arith.constant 0 : i32
    %11 = arith.cmpi eq, %arg1, %c0_i32_10 : i32
    %12 = arith.extui %11 : i1 to i32
    %c0_i32_11 = arith.constant 0 : i32
    %13 = arith.cmpi ne, %12, %c0_i32_11 : i32
    scf.if %13 {
      %c0_12 = arith.constant 0 : index
      %c0_13 = arith.constant 0 : index
      %14 = vector.load %arg6[%c0_12, %c0_13] : memref<8x8xf32, #tpu.memory_space<vmem>>, vector<8x8xf32>
      %c0_14 = arith.constant 0 : index
      %c0_15 = arith.constant 0 : index
      %15 = vector.load %arg4[%c0_14, %c0_15] : memref<8x128xf32, #tpu.memory_space<vmem>>, vector<8x128xf32>
      %cst_16 = arith.constant dense<0.000000e+00> : vector<8x128xf32>
      %16 = tpu.matmul %14, %15, %cst_16 {dimension_numbers = #tpu.dot_dimension_numbers<[1], [0], [0], [1], [0, 0, 1, 1], [], []>} : vector<8x8xf32>, vector<8x128xf32>, vector<8x128xf32> -> vector<8x128xf32>
      %c0_17 = arith.constant 0 : index
      %c0_18 = arith.constant 0 : index
      %c0_19 = arith.constant 0 : index
      %17 = vector.load %arg5[%c0_17, %c0_18, %c0_19] : memref<1x8x128xf32, #tpu.memory_space<vmem>>, vector<1x8x128xf32>
      %18 = vector.shape_cast %17 : vector<1x8x128xf32> to vector<8x128xf32>
      %19 = vector.shape_cast %16 : vector<8x128xf32> to vector<1x8x128xf32>
      tpu.vector_store %arg5[%c0_17, %c0_18, %c0_19], %19 {strides = array<i32>} : memref<1x8x128xf32, #tpu.memory_space<vmem>>, vector<1x8x128xf32>,
    } else {
    }
    return
  }
  func.func @transform_0(%arg0: i32, %arg1: i32) -> (i32, i32, i32) {
    %c0_i32 = arith.constant 0 : i32
    %c0_i32_0 = arith.constant 0 : i32
    return %arg0, %c0_i32, %arg1 : i32, i32, i32
  }
  func.func @transform_1(%arg0: i32, %arg1: i32) -> (i32, i32, i32) {
    %c0_i32 = arith.constant 0 : i32
    %c0_i32_0 = arith.constant 0 : i32
    return %arg0, %c0_i32, %arg1 : i32, i32, i32
  }
  func.func @transform_2(%arg0: i32, %arg1: i32) -> (i32, i32) {
    %c0_i32 = arith.constant 0 : i32
    %c0_i32_0 = arith.constant 0 : i32
    %c0_i32_1 = arith.constant 0 : i32
    return %c0_i32, %c0_i32_0 : i32, i32
  }
  func.func @transform_3(%arg0: i32, %arg1: i32) -> (i32, i32, i32) {
    %c0_i32 = arith.constant 0 : i32
    %c0_i32_0 = arith.constant 0 : i32
    %c0_i32_1 = arith.constant 0 : i32
    return %arg0, %c0_i32, %c0_i32_0 : i32, i32, i32
  }
}

</mosaic_0001>

<bundles_post_ra>
// kernel: ccb_forward.1
= control target key start
LH: loop header
LB: loop body
LE: loop exit
PB: predicated region body
PF: predicated region fallthrough
CT: control target
= control target key end

     0   :  { %8 = vsyncpa [#allocation4], 0  ;;  %s794_s0 = inlined_call_operand.vmem [shape: bf16[2,8,256], index: 0, kind: input, shape index: {}]   ;;  %s795_s1 = inlined_call_operand.vmem [shape: bf16[2,8,256], index: 1, kind: input, shape index: {}]   ;;  %s796_s2 = inlined_call_operand.vmem [shape: f32[8,128], index: 2, kind: input, shape index: {}]   ;;  %s797_s3 = inlined_call_operand.hbm [shape: f32[2,8,128], index: 3, kind: output, shape index: {}]  }
   0x1   :  { %10 = vsyncpa [#allocation4 + $0x1], 0  ;;  %s674_s12 = smov 0   ;;  %s676_s13 = smov 0  }
   0x2   :  { %s678_s14 = smov 0   ;;  %s680_s15 = smov 0  }
   0x3   :  { %s682_s16 = smov 0   ;;  %s684_s17 = smov 0  }
   0x4 LB: > { %s484_s18 = sadd.s32 4294967295, %s649_s17   ;;  %s485_s19 = sadd.s32 4294967294, %s649_s17   ;;  %s649_s17 = sphi %s684_s17, %s16_s17   ;;  %s645_s16 = sphi %s682_s16, %s804_s16   ;;  %s641_s15 = sphi %s680_s15, %s803_s15   ;;  %s637_s14 = sphi %s678_s14, %s802_s14   ;;  %s633_s13 = sphi %s676_s13, %s801_s13   ;;  %s629_s12 = sphi %s674_s12, %s800_s12  }
   0x5   : > { %s28_s20 = sadd.s32 1, %s645_s16  ;;  %s112_s21 = sadd.s32 1, %s637_s14 }
   0x6   : > { %p30_p0 = scmp.ge.s32.totalorder %s28_s20, 2  ;;  %p122_p1 = scmp.ne.s32.totalorder %s637_s14, %s633_s13 }
   0x7   : > { %p123_p2 = scmp.eq.s32.totalorder %s484_s18, 1  ;;  %p128_p3 = scmp.ne.s32.totalorder %s633_s13, %s629_s12 }
   0x8   : > { %s806_s20 = smov (%p30_p0, %s28_s20), 0  ;;  %p129_p5 = scmp.eq.s32.totalorder %s485_s19, 1 }
   0x9   : > { %p714_p4 = por %p123_p2, %p122_p1  ;;  %s109_s23 = ssub.s32 %s645_s16, %s806_s20 }
   0xa   : > { %p488_p6 = scmp.ge.s32.totalorder %s649_s17, 1  ;;  %p110_p7 = scmp.eq.s32.totalorder %s109_s23, 0 }
   0xb   : > { %p721_p8 = por %p129_p5, %p128_p3  ;;  %p176_p9 = scmp.lt.s32.totalorder %s649_s17, 3 }
   0xc   : > { %s727_s25 = scalar_select %p110_p7, %s637_s14, %s112_s21  }
   0xd   : > { %p177_p10 = pnand %p488_p6, %p176_p9 }
   0xe   : > { %p214_p11 = scmp.lt.s32.totalorder (!%p177_p10), %s641_s15, 1  ;;  %s210_s9 = sand.u32 (!%p177_p10), 1, %s633_s13  }
   0xf   : > { %180 = sbr.rel (%p177_p10) target bundleno = 445 (0x1bd), region = 32  ;;  %s489_s10 = sshll.u32 (!%p177_p10), %s210_s9, 3 }
  0x10   : > { %s212_s11 = scalar_lea.vmem (!%p177_p10), [#allocation3], %s489_s10  ;;  %s500_s19 = sshll.u32 (!%p177_p10), %s641_s15, 7 }
  0x11   : > { %s393_s18 = sshll.u32 (!%p177_p10), %s212_s11, 4  ;;  %s745_s18 = int_to_ptr.vmem [resolvable:$true] %s393_s18 }
  0x12   : > { %s573_s28 = scalar_lea.vmem (!%p177_p10), %s745_s18, 128 }
  0x13   : > { %p574_p12 = scmp.ne.s32.totalorder (!%p177_p10), %s745_s18, %s573_s28 }
  0x14   : > { %vm238_vm0 = vcmask 64512   ;;  %v651_v0 = vmov 0.0   ;;  %s215_s26 = scalar_select %p214_p11, %s641_s15, 1  ;;  %v304_v7 = vld [vmem:[%s796_s2] sm:$0xff]  ;;  %vm652_vm1 = vmmov 0  }
  0x15   : > { %239 = vst.msk [vmem:[#allocation2] sm:$0xff] %vm238_vm0, %v651_v0  ;;  %507 = vmatprep.subr.mxu1 %v651_v0  ;;  %509 = vmatprep.mubr.msk.f32.mxu1 %vm652_vm1, %v651_v0  ;;  %p575_p13 = pnand %p574_p12, %p714_p4  ;;  %s653_s15 = smov [#allocation3]  }
  0x16   : > { %s503_s27 = sshll.u32 %s215_s26, 3  ;;  %508 = vmatpush3.msra.mxu1 %v304_v7  ;;  %s750_s26 = scalar_lea.hbm %s797_s3, %s500_s19 }
  0x17   : > { %s221_s30 = scalar_lea.vmem %s794_s0, %s503_s27  ;;  %s231_s6 = scalar_lea.vmem %s795_s1, %s503_s27 }
  0x18   : > { %v242_v1 = vld [vmem:[%s221_s30] sm:$0xff]  ;;  %s380_s27 = scalar_lea.sflag [#allocation4], %s210_s9  ;;  %p576_p0 = pneg %p575_p13 }
  0x19   : > { %v241_v2 = vld [vmem:[%s231_s6] sm:$0xff]  ;;  %v497_v3 = vcombine.high %v242_v1, %v242_v1  ;;  %v496_v4 = vcombine.low %v242_v1, %v242_v1  ;;  %s577_s29 = sshll.u32 %s653_s15, 4  ;;  %s578_s29 = int_to_ptr.vmem [resolvable:$false] %s577_s29 }
  0x1a   : > { %v495_v5 = vcombine.high %v241_v2, %v241_v2  ;;  %v494_v6 = vcombine.low %v241_v2, %v241_v2  ;;  %s579_s30 = scalar_lea.vmem %s578_s29, 256  ;;  %p580_p1 = scmp.lt.s32.totalorder %s745_s18, %s578_s29 }
  0x1b   : > { %271 = vmatprep.subr.bf16.mxu0 %v497_v3  ;;  %p581_p2 = scmp.lt.s32.totalorder %s579_s30, %s573_s28 }
  0x1c   : > { %289 = vmatprep.mubr.bf16.mxu0 %v495_v5  ;;  %272 = vmatpush1.bf16.xpose.msra.mxu0 %v496_v4  ;;  %v240_v8 = vld [vmem:[#allocation2] sm:$0xff] }
  0x1d   : > { %p582_p3 = por %p581_p2, %p580_p1 }
  0x1f   : > { %p583_p5 = pnand %p582_p3, %p576_p0 }
  0x23   : > { %290 = vmatmul.mubr.bf16.vlgmr.msra.gmra.mxu0 %v494_v6 }
  0xe3   : > { %v291_v9 = vpop.f32.mrf.mxu0 }
  0xe4   : > { %v297_v10 = vadd.f32 %v291_v9, %v240_v8 }
  0xe5   : > { %v293_v11 = vpop.f32.mrf.mxu0 }
  0xe6   : > { %299 = vst.msk [vmem:[#allocation2] sm:$0xff] %vm238_vm0, %v297_v10 }
  0xe7   : > { %v294_v12 = vpop.f32.mrf.mxu0 }
  0xe9   : > { %v295_v13 = vpop.f32.mrf.mxu0 }
  0xed   : > { %v303_v14 = vld [vmem:[#allocation2] sm:$0xff] }
  0xee   : > { %510 = vmatmul.mubr.msk.f32.vlgmr.msra.gmra.mxu1 %vm238_vm0, %v303_v14 }
 0x1ae   : > { %v374_v15 = vpop.f32.mrf.mxu1 }
 0x1af   : > { %378 = vst [vmem:[%s212_s11] sm:$0xff] %v374_v15 }
 0x1b0   : > { %v511_v16 = vpop.f32.mrf.mxu1 }
 0x1b1   : > { %586 = shalt.err (!%p583_p5)
}
 0x1b2   : > { %s587_s4 = scalar_lea.hbm %s750_s26, 128  ;;  %s591_s7 = scalar_lea.hbm %s797_s3, 256 }
 0x1b3   : > { %p588_p6 = scmp.ne.s32.totalorder %s750_s26, %s587_s4  ;;  %p592_p10 = scmp.lt.s32.totalorder %s750_s26, %s797_s3 }
 0x1b4   : > { %p593_p11 = scmp.lt.s32.totalorder %s591_s7, %s587_s4 }
 0x1b5   : > { %p589_p7 = pnand %p588_p6, %p714_p4 }
 0x1b6   : > { %p594_p12 = por %p593_p11, %p592_p10 }
 0x1b7   : > { %p590_p9 = pneg %p589_p7 }
 0x1b9   : > { %p595_p13 = pnand %p594_p12, %p590_p9 }
 0x1bb   : > { %598 = shalt.err (!%p595_p13)
}
 0x1bc   : > { %512 = dma.vmem_to_hbm [thread:$0]  (%p714_p4), %s745_s18, 128, %s750_s26, %s380_s27  }
 0x1bd PF: > { %p518_p0 = scmp.ge.s32.totalorder %s649_s17, 2  ;;  %s405_s10 = sand.u32 1, %s629_s12  }
 0x1be   : > { %s406_s11 = scalar_lea.sflag [#allocation4], %s405_s10 }
 0x1bf   : > { %p515_p1 = pnand %p518_p0, %p721_p8 }
 0x1c1   : > { %p516_p2 = pneg %p515_p1 }
 0x1c3   : > { %624 = dma.done.wait (%p516_p2), %s406_s11, 128  }
 0x1c4   : > { %626 = vsyncadd (%p516_p2), %s406_s11, 4294967168  ;;  %s16_s17 = sadd.s32 1, %s649_s17   ;;  %s800_s12 = smov %s633_s13 }
 0x1c5   : > { %p13_p3 = scmp.ge.s32.totalorder %s16_s17, 4   ;;  %s801_s13 = smov %s637_s14 }
 0x1c6   : > { %s802_s14 = smov %s727_s25  ;;  %s803_s15 = smov %s645_s16 }
 0x1c7   : > { %s804_s16 = smov %s806_s20  ;;  %15 = sbr.rel (!%p13_p3) target bundleno = 4 (0x4), region = 78 }
 0x1cc   :  { %411 = vsyncpa [#allocation4], 1 }
 0x1cd   :  { %413 = vsyncpa [#allocation4 + $0x1], 1 }

</bundles_post_ra>
